<compile_context>
chip_gen: v6e
topology: v6e:2x2x1
jax: 0.10.0
libtpu: 0.0.40
codegen_flags: <defaults>
</compile_context>

<pallas_src>
import jax
import jax.numpy as jnp
from jax import lax
from jax.experimental import pallas as pl
from jax.experimental.pallas import tpu as pltpu


def _vmem_limit_bytes():
    """Scoped-VMEM budget: ~3/4 of physical, capped at 100 MiB.

    v7x (64 MiB physical) -> 48 MiB; v5e/v6e (128 MiB) -> 100 MiB.
    """
    try:
        cap = pltpu.get_tpu_info().vmem_capacity_bytes
    except Exception:
        cap = 64 * 1024 * 1024  # conservative fallback (v7x physical size)
    return int(min(cap * 3 // 4, 100 * 1024 * 1024))


def _fuse_params(w1, b1, w2, b2, x_dtype):
    """Fold the two linears into one affine (no activation between them)."""
    w1f = w1.astype(jnp.float32)
    w2f = w2.astype(jnp.float32)
    w_fused = jnp.dot(w1f, w2f, preferred_element_type=jnp.float32)          # [20, 5]
    b_fused = (jnp.dot(b1.astype(jnp.float32), w2f,
                       preferred_element_type=jnp.float32)
               + b2.astype(jnp.float32))                                      # [1, 5], kept f32
    return w_fused.astype(x_dtype), b_fused


# ----------------------------- kernels ------------------------------------ #

def _affine_rows_kernel(x_ref, w_ref, b_ref, o_ref):
    # Row-major batch: x [tb, 20], w [20, 5], b [1, 5] (f32)  ->  o [tb, 5]
    acc = jnp.dot(x_ref[...], w_ref[...], preferred_element_type=jnp.float32)
    o_ref[...] = (acc + b_ref[...]).astype(o_ref.dtype)


def _affine_lanes_kernel(x_ref, w_ref, b_ref, o_ref):
    # Batch on the 128-lane axis: x [20, tb], w [20, 5], b [5, 1] (f32)
    # o[5, tb] = W^T @ x + b   (contraction over the feature dim, no transpose)
    acc = lax.dot_general(w_ref[...], x_ref[...],
                          dimension_numbers=(((0,), (0,)), ((), ())),
                          preferred_element_type=jnp.float32)
    o_ref[...] = (acc + b_ref[...]).astype(o_ref.dtype)


# ----------------------------- wrappers ------------------------------------ #

def toy_model_forward(x, w1, b1, w2, b2, *, block_b=8192):
    """Spec-interface forward: x [B, 20] -> [B, 5] (row-major batch).

    Keeps the module's native layout (no wrapper-side transpose, no pad/slice
    HBM round trips).  Prefer `toy_model_forward_t` when the surrounding
    pipeline can produce/consume batch-on-lanes data.
    """
    B, d_in = x.shape
    d_out = w2.shape[1]
    itemsize = jnp.dtype(x.dtype).itemsize
    vmem_limit = _vmem_limit_bytes()

    # VMEM per batch-row per step: in + out blocks, each lane-padded to 128 and
    # double-buffered.  Keep the working set under ~half the scoped budget.
    per_row = 2 * 2 * 128 * itemsize
    block_b = min(block_b, max(1024, (vmem_limit // 2) // per_row))

    if B <= block_b:
        tb = B                      # single full-extent block: no (8,128) constraint
    else:
        tb = (block_b // 8) * 8     # sublane-aligned streaming tile
    grid = (pl.cdiv(B, tb),)        # ragged last block: padded on read, dropped on write

    w_f, b_f = _fuse_params(w1, b1, w2, b2, x.dtype)

    flops = 2 * B * d_in * d_out
    bytes_accessed = ((B * d_in + B * d_out) * itemsize
                      + w_f.size * itemsize + b_f.size * 4)

    return pl.pallas_call(
        _affine_rows_kernel,
        out_shape=jax.ShapeDtypeStruct((B, d_out), x.dtype),
        grid_spec=pltpu.PrefetchScalarGridSpec(
            num_scalar_prefetch=0,
            grid=grid,
            in_specs=[
                # TODO(synk): if xprof shows exposed DMA on the x stream, add
                # pipeline_mode=pl.Buffered(3) to this spec.
                pl.BlockSpec((tb, d_in), lambda i: (i, 0)),      # x: streamed per tile
                pl.BlockSpec((d_in, d_out), lambda i: (0, 0)),   # fused W: VMEM-resident
                pl.BlockSpec((1, d_out), lambda i: (0, 0)),      # fused b (f32): resident
            ],
            out_specs=pl.BlockSpec((tb, d_out), lambda i: (i, 0)),
        ),
        compiler_params=pltpu.CompilerParams(
            dimension_semantics=("parallel",),   # megacore sharding of batch tiles (v7x)
            vmem_limit_bytes=vmem_limit,
        ),
        cost_estimate=pl.CostEstimate(flops=flops, transcendentals=0,
                                      bytes_accessed=bytes_accessed),
    )(x, w_f, b_f)


def toy_model_forward_t(x_t, w1, b1, w2, b2, *, block_b=32768):
    """Lane-dense forward: x_t [20, B] (batch on the 128-lane axis) -> [5, B].

    Preferred path when the producer/consumer can hand over the transposed
    layout: contiguous lane-dense DMAs, unmasked stores, and ~5-25x smaller
    VMEM blocks than the row-major layout.
    """
    d_in, B = x_t.shape
    d_out = w2.shape[1]
    itemsize = jnp.dtype(x_t.dtype).itemsize
    vmem_limit = _vmem_limit_bytes()

    # VMEM per batch-column per step: x (20->24 sublanes) + out (5->8), double-buffered.
    per_col = 2 * (24 + 8) * itemsize
    block_b = min(block_b, max(4096, (vmem_limit // 2) // per_col))

    if B <= block_b:
        tb = B
    else:
        tb = (block_b // 128) * 128  # lane-aligned streaming tile
    grid = (pl.cdiv(B, tb),)

    w_f, b_f = _fuse_params(w1, b1, w2, b2, x_t.dtype)
    b_f_t = b_f.reshape(d_out, 1)    # [5, 1], f32

    flops = 2 * B * d_in * d_out
    bytes_accessed = ((B * d_in + B * d_out) * itemsize
                      + w_f.size * itemsize + b_f_t.size * 4)

    return pl.pallas_call(
        _affine_lanes_kernel,
        out_shape=jax.ShapeDtypeStruct((d_out, B), x_t.dtype),
        grid_spec=pltpu.PrefetchScalarGridSpec(
            num_scalar_prefetch=0,
            grid=grid,
            in_specs=[
                pl.BlockSpec((d_in, tb), lambda i: (0, i)),      # x_t: streamed, lane-dense
                pl.BlockSpec((d_in, d_out), lambda i: (0, 0)),   # fused W: VMEM-resident
                pl.BlockSpec((d_out, 1), lambda i: (0, 0)),      # fused b (f32): resident
            ],
            out_specs=pl.BlockSpec((d_out, tb), lambda i: (0, i)),
        ),
        compiler_params=pltpu.CompilerParams(
            dimension_semantics=("parallel",),
            vmem_limit_bytes=vmem_limit,
        ),
        cost_estimate=pl.CostEstimate(flops=flops, transcendentals=0,
                                      bytes_accessed=bytes_accessed),
    )(x_t, w_f, b_f_t)


if __name__ == "__main__":
    key = jax.random.PRNGKey(0)
    kx, k1, kb1, k2, kb2 = jax.random.split(key, 5)

    B, D_IN, D_HID, D_OUT = 8, 20, 10, 5

    # Deterministic synthetic parameters (PyTorch-Linear-like uniform init).
    x = jax.random.normal(kx, (B, D_IN), dtype=jnp.float32)
    lim1 = 1.0 / (D_IN ** 0.5)
    lim2 = 1.0 / (D_HID ** 0.5)
    w1 = jax.random.uniform(k1, (D_IN, D_HID), minval=-lim1, maxval=lim1, dtype=jnp.float32)
    b1 = jax.random.uniform(kb1, (1, D_HID), minval=-lim1, maxval=lim1, dtype=jnp.float32)
    w2 = jax.random.uniform(k2, (D_HID, D_OUT), minval=-lim2, maxval=lim2, dtype=jnp.float32)
    b2 = jax.random.uniform(kb2, (1, D_OUT), minval=-lim2, maxval=lim2, dtype=jnp.float32)

    # Pure-JAX reference of the unfused module semantics.
    def ref_fn(xx):
        return (xx @ w1 + b1) @ w2 + b2

    # 1) Small batch, single block, spec-interface path (f32 end-to-end).
    out = jax.block_until_ready(toy_model_forward(x, w1, b1, w2, b2))
    assert out.shape == (B, D_OUT)
    assert jnp.allclose(out, ref_fn(x), atol=1e-4, rtol=1e-4)

    # 2) Non-multiple-of-tile batch: multi-step ragged grid, no pad / no slice.
    B2 = 300
    x2 = jax.random.normal(jax.random.PRNGKey(1), (B2, D_IN), dtype=jnp.float32)
    out2 = jax.block_until_ready(toy_model_forward(x2, w1, b1, w2, b2, block_b=128))
    assert out2.shape == (B2, D_OUT)
    assert jnp.allclose(out2, ref_fn(x2), atol=1e-4, rtol=1e-4)

    # 3) Lane-dense (batch-on-lanes) path: single block and ragged multi-block.
    x2_t = x2.T   # in production the producer hands over this layout directly
    out3 = jax.block_until_ready(toy_model_forward_t(x2_t, w1, b1, w2, b2))
    assert out3.shape == (D_OUT, B2)
    assert jnp.allclose(out3, ref_fn(x2).T, atol=1e-4, rtol=1e-4)

    out4 = jax.block_until_ready(toy_model_forward_t(x2_t, w1, b1, w2, b2, block_b=128))
    assert jnp.allclose(out4, ref_fn(x2).T, atol=1e-4, rtol=1e-4)

    print("KERNEL_OK")
</pallas_src>

<mosaic_0001>
module attributes {stable_mosaic.version = 11 : i64} {
  func.func @_affine_rows_kernel(%arg0: i32, %arg1: memref<8x20xf32, #tpu.memory_space<vmem>>, %arg2: memref<20x5xf32, #tpu.memory_space<vmem>>, %arg3: memref<1x5xf32, #tpu.memory_space<vmem>>, %arg4: memref<8x5xf32, #tpu.memory_space<vmem>>) attributes {dimension_semantics = [#tpu.dimension_semantics<parallel>], iteration_bounds = array<i64: 1>, scalar_prefetch = 0 : i64, scratch_operands = 0 : i64, tpu.core_type = #tpu.core_type<tc>, window_params = [{transform_indices = @transform_0, window_bounds = array<i64: 8, 20>}, {pipeline_mode = #tpu.pipeline_mode<synchronous>, transform_indices = @transform_1, window_bounds = array<i64: 20, 5>}, {pipeline_mode = #tpu.pipeline_mode<synchronous>, transform_indices = @transform_2, window_bounds = array<i64: 1, 5>}, {transform_indices = @transform_3, window_bounds = array<i64: 8, 5>}]} {
    %c0 = arith.constant 0 : index
    %c0_0 = arith.constant 0 : index
    %0 = vector.load %arg1[%c0, %c0_0] : memref<8x20xf32, #tpu.memory_space<vmem>>, vector<8x20xf32>
    %c0_1 = arith.constant 0 : index
    %c0_2 = arith.constant 0 : index
    %1 = vector.load %arg2[%c0_1, %c0_2] : memref<20x5xf32, #tpu.memory_space<vmem>>, vector<20x5xf32>
    %cst = arith.constant dense<0.000000e+00> : vector<8x5xf32>
    %2 = tpu.matmul %0, %1, %cst {dimension_numbers = #tpu.dot_dimension_numbers<[1], [0], [0], [1], [0, 0, 1, 1], [], []>} : vector<8x20xf32>, vector<20x5xf32>, vector<8x5xf32> -> vector<8x5xf32>
    %c0_3 = arith.constant 0 : index
    %c0_4 = arith.constant 0 : index
    %3 = vector.load %arg3[%c0_3, %c0_4] : memref<1x5xf32, #tpu.memory_space<vmem>>, vector<1x5xf32>
    %4 = vector.broadcast %3 : vector<1x5xf32> to vector<8x5xf32>
    %5 = arith.addf %2, %4 : vector<8x5xf32>
    %c0_5 = arith.constant 0 : index
    %c0_6 = arith.constant 0 : index
    %6 = vector.load %arg4[%c0_5, %c0_6] : memref<8x5xf32, #tpu.memory_space<vmem>>, vector<8x5xf32>
    tpu.vector_store %arg4[%c0_5, %c0_6], %5 {strides = array<i32>} : memref<8x5xf32, #tpu.memory_space<vmem>>, vector<8x5xf32>,
    return
  }
  func.func @transform_0(%arg0: i32) -> (i32, i32) {
    %c0_i32 = arith.constant 0 : i32
    %c0_i32_0 = arith.constant 0 : i32
    return %arg0, %c0_i32 : i32, i32
  }
  func.func @transform_1(%arg0: i32) -> (i32, i32) {
    %c0_i32 = arith.constant 0 : i32
    %c0_i32_0 = arith.constant 0 : i32
    %c0_i32_1 = arith.constant 0 : i32
    return %c0_i32, %c0_i32_0 : i32, i32
  }
  func.func @transform_2(%arg0: i32) -> (i32, i32) {
    %c0_i32 = arith.constant 0 : i32
    %c0_i32_0 = arith.constant 0 : i32
    %c0_i32_1 = arith.constant 0 : i32
    return %c0_i32, %c0_i32_0 : i32, i32
  }
  func.func @transform_3(%arg0: i32) -> (i32, i32) {
    %c0_i32 = arith.constant 0 : i32
    %c0_i32_0 = arith.constant 0 : i32
    return %arg0, %c0_i32 : i32, i32
  }
}

</mosaic_0001>

<bundles_post_ra>
// kernel: tpu_custom_call.1
= control target key start
LH: loop header
LB: loop body
LE: loop exit
PB: predicated region body
PF: predicated region fallthrough
CT: control target
= control target key end

     0   :  { %vm30_vm0 = vcmask 1043456   ;;  %v161_v1 = vmov 0.0   ;;  %vm162_vm1 = vmmov 0   ;;  %s202_s0 = inlined_call_operand.vmem [shape: f32[8,20], index: 0, kind: input, shape index: {}]   ;;  %s203_s1 = inlined_call_operand.vmem [shape: f32[20,5], index: 1, kind: input, shape index: {}]   ;;  %s204_s2 = inlined_call_operand.vmem [shape: f32[1,5], index: 2, kind: input, shape index: {}]   ;;  %s205_s3 = inlined_call_operand.hbm [shape: f32[8,5], index: 3, kind: output, shape index: {}]  }
   0x1   :  { %v18_v0 = vld [vmem:[%s203_s1 + $0x10] sm:$0xf]  ;;  %127 = vmatprep.subr.mxu0 %v161_v1  ;;  %v17_v2 = vld [vmem:[%s203_s1 + $0x8] sm:$0xff]  ;;  %133 = vmatprep.mubr.msk.f32.mxu0 %vm162_vm1, %v161_v1 }
   0x2   :  { %128 = vmatpush3.msk.msra.mxu0 %vm30_vm0, %v18_v0 }
   0x3   :  { %8 = vsyncpa [#allocation3], 0  ;;  %129 = vmatprep.subr.mxu0 %v161_v1  ;;  %v16_v3 = vld [vmem:[%s203_s1] sm:$0xff]  ;;  %vm26_vm2 = vcmask 162816   ;;  %s163_s22 = smov [#allocation2]   ;;  %vm104_vm3 = vcmask 39936  }
   0x4   :  { %130 = vmatpush3.msra.mxu0 %v17_v2  ;;  %v15_v4 = vld [vmem:[%s202_s0] sm:$0xff]  ;;  %s112_s23 = sshll.u32 %s163_s22, 4  ;;  %s113_s23 = int_to_ptr.vmem [resolvable:$true] %s112_s23 }
   0x5   :  { %131 = vmatprep.subr.mxu0 %v161_v1  ;;  %v120_v5 = vld [vmem:[%s204_s2] ss:$0 sm:$0xff]  ;;  %s139_s1 = scalar_lea.vmem %s113_s23, 128  ;;  %p144_p1 = scmp.lt.s32.totalorder %s113_s23, %s113_s23 }
   0x6   :  { %132 = vmatpush3.msra.mxu0 %v16_v3  ;;  %p140_p0 = scmp.ne.s32.totalorder %s113_s23, %s139_s1  ;;  %p145_p2 = scmp.lt.s32.totalorder %s139_s1, %s139_s1 }
   0x7   :  { %134 = vmatmul.mubr.msk.f32.vlgmr.msra.gmra.mxu0 %vm26_vm2, %v15_v4 }
   0x8   :  { %p146_p3 = por %p145_p2, %p144_p1 }
   0xa   :  { %p147_p4 = pnand %p146_p3, %p140_p0 }
  0xc7   :  { %v100_v6 = vpop.f32.mrf.mxu0 }
  0xc8   :  { %v101_v7 = vadd.f32 %v120_v5, %v100_v6 }
  0xc9   :  { %v135_v8 = vpop.f32.mrf.mxu0 }
  0xca   :  { %105 = vst.msk [vmem:[#allocation2] sm:$0xff] %vm104_vm3, %v101_v7 }
  0xcb   :  { %150 = shalt.err (!%p147_p4)
}
  0xcc   :  { %115 = dma.vmem_to_hbm [thread:$0]  %s113_s23, 128, %s205_s3, [#allocation3]  }
  0xcd   :  { %159 = dma.done.wait [#allocation3], 128  }
  0xce   :  { %160 = vsyncadd [#allocation3], 4294967168 }
  0xcf   :  { %119 = vsyncpa [#allocation3], 1 }

</bundles_post_ra>
